<compile_context>
chip_gen: v7x
topology: tpu7x:2x2x1
jax: 0.10.0
libtpu: 0.0.40
codegen_flags: <defaults>
</compile_context>

<pallas_src>
import jax
import jax.numpy as jnp
from jax.experimental import pallas as pl
from jax.experimental.pallas import tpu as pltpu


def _rbf_kernel(x_ref, off_ref, coeff_ref, o_ref):
    # x_ref:     (tm, k)        k packed input values per row
    # off_ref:   (1, k*n_rbf)   Gaussian centers, tiled k times along lanes
    # coeff_ref: (1, k*n_rbf)   -0.5/width^2, tiled k times along lanes
    # o_ref:     (tm, k*n_rbf)  lane-dense output block
    x = x_ref[...]
    off = off_ref[...]
    coeff = coeff_ref[...]

    tm, k = x.shape
    n_lanes = off.shape[1]
    n_rbf = n_lanes // k

    # Repeat each packed input value across its n_rbf lanes:
    # lane broadcast (XLU/VPU) + lane concat; cheap vs. the EUP exp below.
    xb = jnp.concatenate(
        [jnp.broadcast_to(x[:, i:i + 1], (tm, n_rbf)) for i in range(k)],
        axis=-1)                                   # (tm, k*n_rbf)

    diff = xb - off
    o_ref[...] = jnp.exp(coeff * (diff * diff)).astype(o_ref.dtype)


def gaussian_rbf_pallas(inputs, offsets, widths, *, tm=1024,
                        out_dtype=jnp.float32):
    """Pallas implementation of gaussian_rbf(inputs, offsets, widths)."""
    in_shape = inputs.shape
    n_rbf = offsets.shape[0]

    # Lane packing factor: pack k inputs per output row so the output block
    # is >= 128 lanes wide (k*n_rbf = 128 for n_rbf = 32).
    k = max(1, 128 // n_rbf)
    n_lanes = k * n_rbf

    x_flat = inputs.reshape(-1).astype(jnp.float32)
    m = x_flat.shape[0]

    rows = pl.cdiv(m, k)
    # Clamp the row tile for tiny inputs; keep it a multiple of 8 (sublanes).
    tm_eff = min(tm, pl.cdiv(rows, 8) * 8)
    rows_pad = pl.cdiv(rows, tm_eff) * tm_eff
    m_pad = rows_pad * k
    if m_pad != m:
        x_flat = jnp.pad(x_flat, (0, m_pad - m))
    x = x_flat.reshape(rows_pad, k)

    off = offsets.astype(jnp.float32).reshape(-1)
    w = widths.astype(jnp.float32).reshape(-1)
    coeff = -0.5 / (w * w)                       # hoisted out of the kernel
    off_t = jnp.tile(off, k).reshape(1, n_lanes)
    coeff_t = jnp.tile(coeff, k).reshape(1, n_lanes)

    out = pl.pallas_call(
        _rbf_kernel,
        out_shape=jax.ShapeDtypeStruct((rows_pad, n_lanes), out_dtype),
        grid_spec=pltpu.PrefetchScalarGridSpec(
            num_scalar_prefetch=0,
            grid=(rows_pad // tm_eff,),
            in_specs=[
                pl.BlockSpec((tm_eff, k), lambda i: (i, 0)),
                pl.BlockSpec((1, n_lanes), lambda i: (0, 0)),
                pl.BlockSpec((1, n_lanes), lambda i: (0, 0)),
            ],
            out_specs=pl.BlockSpec((tm_eff, n_lanes), lambda i: (i, 0)),
        ),
        compiler_params=pltpu.CompilerParams(
            dimension_semantics=("parallel",)),
    )(x, off_t, coeff_t)

    # (rows_pad, k*n_rbf) row-major == (rows_pad*k, n_rbf) row-major: free.
    out = out.reshape(m_pad, n_rbf)[:m]
    return out.reshape(*in_shape, n_rbf)


def make_gaussian_rbf_params(n_rbf: int, cutoff: float, start: float = 0.0):
    """Deterministic parameter construction mirroring GaussianRBF.__init__."""
    offsets = jnp.linspace(start, cutoff, n_rbf, dtype=jnp.float32)
    width_val = jnp.abs(offsets[1] - offsets[0])
    widths = width_val * jnp.ones_like(offsets)
    return offsets, widths


if __name__ == "__main__":
    # Module hyper-params (synthetic, deterministic).
    n_rbf = 32
    cutoff = 5.0
    start = 0.0
    offsets, widths = make_gaussian_rbf_params(n_rbf, cutoff, start)

    # Example inputs: a small batch of "distances", shape (batch=2, seq=8).
    key = jax.random.PRNGKey(0)
    x = jax.random.uniform(key, (2, 8), dtype=jnp.float32, minval=0.0,
                           maxval=cutoff)

    y = gaussian_rbf_pallas(x, offsets, widths)
    y = jax.block_until_ready(y)

    # Pure-JAX reference check (same math as the PyTorch module).
    coeff = -0.5 / (widths ** 2)
    diff = x[..., None] - offsets
    y_ref = jnp.exp(coeff * diff ** 2)
    assert y.shape == (2, 8, n_rbf)
    assert jnp.allclose(y, y_ref, atol=1e-6, rtol=1e-6)

    print("KERNEL_OK")
</pallas_src>

<mosaic_0001>
module attributes {stable_mosaic.version = 11 : i64} {
  func.func @_rbf_kernel(%arg0: i32, %arg1: memref<8x4xf32, #tpu.memory_space<vmem>>, %arg2: memref<1x128xf32, #tpu.memory_space<vmem>>, %arg3: memref<1x128xf32, #tpu.memory_space<vmem>>, %arg4: memref<8x128xf32, #tpu.memory_space<vmem>>) attributes {dimension_semantics = [#tpu.dimension_semantics<parallel>], iteration_bounds = array<i64: 1>, scalar_prefetch = 0 : i64, scratch_operands = 0 : i64, tpu.core_type = #tpu.core_type<tc>, window_params = [{transform_indices = @transform_0, window_bounds = array<i64: 8, 4>}, {pipeline_mode = #tpu.pipeline_mode<synchronous>, transform_indices = @transform_1, window_bounds = array<i64: 1, 128>}, {pipeline_mode = #tpu.pipeline_mode<synchronous>, transform_indices = @transform_2, window_bounds = array<i64: 1, 128>}, {transform_indices = @transform_3, window_bounds = array<i64: 8, 128>}]} {
    %c0 = arith.constant 0 : index
    %c0_0 = arith.constant 0 : index
    %0 = vector.load %arg1[%c0, %c0_0] : memref<8x4xf32, #tpu.memory_space<vmem>>, vector<8x4xf32>
    %c0_1 = arith.constant 0 : index
    %c0_2 = arith.constant 0 : index
    %1 = vector.load %arg2[%c0_1, %c0_2] : memref<1x128xf32, #tpu.memory_space<vmem>>, vector<1x128xf32>
    %c0_3 = arith.constant 0 : index
    %c0_4 = arith.constant 0 : index
    %2 = vector.load %arg3[%c0_3, %c0_4] : memref<1x128xf32, #tpu.memory_space<vmem>>, vector<1x128xf32>
    %3 = vector.extract_strided_slice %0 {offsets = [0, 0], sizes = [8, 1], strides = [1, 1]} : vector<8x4xf32> to vector<8x1xf32>
    %4 = vector.shape_cast %3 : vector<8x1xf32> to vector<8x1xf32>
    %5 = vector.broadcast %4 : vector<8x1xf32> to vector<8x32xf32>
    %6 = vector.extract_strided_slice %0 {offsets = [0, 1], sizes = [8, 1], strides = [1, 1]} : vector<8x4xf32> to vector<8x1xf32>
    %7 = vector.shape_cast %6 : vector<8x1xf32> to vector<8x1xf32>
    %8 = vector.broadcast %7 : vector<8x1xf32> to vector<8x32xf32>
    %9 = vector.extract_strided_slice %0 {offsets = [0, 2], sizes = [8, 1], strides = [1, 1]} : vector<8x4xf32> to vector<8x1xf32>
    %10 = vector.shape_cast %9 : vector<8x1xf32> to vector<8x1xf32>
    %11 = vector.broadcast %10 : vector<8x1xf32> to vector<8x32xf32>
    %12 = vector.extract_strided_slice %0 {offsets = [0, 3], sizes = [8, 1], strides = [1, 1]} : vector<8x4xf32> to vector<8x1xf32>
    %13 = vector.shape_cast %12 : vector<8x1xf32> to vector<8x1xf32>
    %14 = vector.broadcast %13 : vector<8x1xf32> to vector<8x32xf32>
    %15 = tpu.concatenate %5, %8, %11, %14 in 1 : vector<8x32xf32>, vector<8x32xf32>, vector<8x32xf32>, vector<8x32xf32> -> vector<8x128xf32>
    %16 = vector.broadcast %1 : vector<1x128xf32> to vector<8x128xf32>
    %17 = arith.subf %15, %16 : vector<8x128xf32>
    %18 = arith.mulf %17, %17 : vector<8x128xf32>
    %19 = vector.broadcast %2 : vector<1x128xf32> to vector<8x128xf32>
    %20 = arith.mulf %19, %18 : vector<8x128xf32>
    %21 = math.exp %20 : vector<8x128xf32>
    %c0_5 = arith.constant 0 : index
    %c0_6 = arith.constant 0 : index
    %22 = vector.load %arg4[%c0_5, %c0_6] : memref<8x128xf32, #tpu.memory_space<vmem>>, vector<8x128xf32>
    tpu.vector_store %arg4[%c0_5, %c0_6], %21 {strides = array<i32>} : memref<8x128xf32, #tpu.memory_space<vmem>>, vector<8x128xf32>,
    return
  }
  func.func @transform_0(%arg0: i32) -> (i32, i32) {
    %c0_i32 = arith.constant 0 : i32
    %c0_i32_0 = arith.constant 0 : i32
    return %arg0, %c0_i32 : i32, i32
  }
  func.func @transform_1(%arg0: i32) -> (i32, i32) {
    %c0_i32 = arith.constant 0 : i32
    %c0_i32_0 = arith.constant 0 : i32
    %c0_i32_1 = arith.constant 0 : i32
    return %c0_i32, %c0_i32_0 : i32, i32
  }
  func.func @transform_2(%arg0: i32) -> (i32, i32) {
    %c0_i32 = arith.constant 0 : i32
    %c0_i32_0 = arith.constant 0 : i32
    %c0_i32_1 = arith.constant 0 : i32
    return %c0_i32, %c0_i32_0 : i32, i32
  }
  func.func @transform_3(%arg0: i32) -> (i32, i32) {
    %c0_i32 = arith.constant 0 : i32
    %c0_i32_0 = arith.constant 0 : i32
    return %arg0, %c0_i32 : i32, i32
  }
}

</mosaic_0001>

<bundles_post_ra>
// kernel: tpu_custom_call.1
= control target key start
LH: loop header
LB: loop body
LE: loop exit
PB: predicated region body
PF: predicated region fallthrough
CT: control target
= control target key end

     0   :  { %v111_v1 = vmov 0   ;;  %v112_v2 = vmov 2   ;;  %s157_s0 = inlined_call_operand.vmem [shape: f32[8,4], index: 0, kind: input, shape index: {}]   ;;  %s158_s1 = inlined_call_operand.vmem [shape: f32[1,128], index: 1, kind: input, shape index: {}]   ;;  %s159_s2 = inlined_call_operand.vmem [shape: f32[1,128], index: 2, kind: input, shape index: {}]   ;;  %s160_s3 = inlined_call_operand.hbm [shape: f32[8,128], index: 3, kind: output, shape index: {}]  }
   0x1   :  { %v15_v0 = vld [vmem:[%s157_s0] sm:$0xff]  ;;  %80 = vset.pattern.permute.xlu0 %v111_v1  ;;  %82 = vset.pattern.permute.xlu1 %v112_v2 }
   0x2   :  { %8 = vsyncpa [#allocation3], 0  ;;  %20 = vperm.xlu0 %80, %v15_v0   ;;  %28 = vperm.xlu1 %82, %v15_v0   ;;  %v113_v3 = vmov 1   ;;  %v114_v4 = vmov 3   ;;  %vm35_vm0 = vcmask 261120   ;;  %vm37_vm1 = vcmask 523264  }
   0x3   :  { %vm39_vm2 = vcmask 785408   ;;  %v73_v10 = vld [vmem:[%s158_s1] ss:$0 sm:$0xff]  ;;  %s115_s17 = smov [#allocation2]  }
   0x4   :  { %v74_v14 = vld [vmem:[%s159_s2] ss:$0 sm:$0xff]  ;;  %s65_s18 = sshll.u32 %s115_s17, 4  ;;  %s66_s18 = int_to_ptr.vmem [resolvable:$true] %s65_s18 }
   0x5   :  { %s87_s19 = scalar_lea.vmem %s66_s18, 128  ;;  %p92_p1 = scmp.lt.s32.totalorder %s66_s18, %s66_s18 }
   0x6   :  { %81 = vset.pattern.permute.xlu0 %v113_v3  ;;  %83 = vset.pattern.permute.xlu1 %v114_v4  ;;  %p88_p0 = scmp.ne.s32.totalorder %s66_s18, %s87_s19  ;;  %p93_p2 = scmp.lt.s32.totalorder %s87_s19, %s87_s19 }
   0x7   :  { %24 = vperm.xlu0 %81, %v15_v0   ;;  %32 = vperm.xlu1 %83, %v15_v0  }
   0x8   :  { %p94_p3 = por %p93_p2, %p92_p1 }
   0xa   :  { %p95_p4 = pnand %p94_p3, %p88_p0 }
   0xb   :  { %84 = vset.pattern.permute.xlu0 %v114_v4 }
  0x81   :  { %v21_v5 = vpop.permute.xlu0 %20  ;;  %v29_v6 = vpop.permute.xlu1 %28 }
  0x86   :  { %v25_v7 = vpop.permute.xlu0 %24  ;;  %v33_v8 = vpop.permute.xlu1 %32 }
  0x87   :  { %v36_v9 = vsel %vm35_vm0, %v21_v5, %v25_v7 }
  0x88   :  { %v38_v11 = vsel %vm37_vm1, %v36_v9, %v29_v6 }
  0x89   :  { %v40_v12 = vsel %vm39_vm2, %v38_v11, %v33_v8 }
  0x8a   :  { %v47_v13 = vsub.f32 %v40_v12, %v73_v10 }
  0x8c   :  { %v48_v15 = vmul.f32 %v47_v13, %v47_v13 }
  0x8e   :  { %v55_v16 = vmul.f32 %v74_v14, %v48_v15 }
  0x90   :  { %v56_v17 = vmul.f32 1.442695, %v55_v16 }
  0x92   :  { %85 = vpow2.f32 %v56_v17 }
  0x9c   :  { %v86_v18 = vpop.eup %85 }
  0x9d   :  { %58 = vst [vmem:[#allocation2] sm:$0xff] %v86_v18 }
  0x9e   :  { %98 = shalt.err (!%p95_p4)
}
  0x9f   :  { %s99_s2 = scalar_lea.hbm %s160_s3, 128 }
  0xa0   :  { %p100_p5 = scmp.ne.s32.totalorder %s160_s3, %s99_s2  ;;  %p103_p6 = scmp.lt.u32.totalorder %s99_s2, %s160_s3 }
  0xa2   :  { %p105_p7 = pnand %p103_p6, %p100_p5 }
  0xa4   :  { %108 = shalt.err (!%p105_p7)
}
  0xa5   :  { %68 = dma.vmem_to_hbm [thread:$0]  %s66_s18, 128, %s160_s3, [#allocation3]  }
  0xa6   :  { %109 = dma.done.wait [#allocation3], 128  }
  0xa7   :  { %110 = vsyncadd [#allocation3], 4294967168 }
  0xa8   :  { %72 = vsyncpa [#allocation3], 1 }

</bundles_post_ra>
